<compile_context>
chip_gen: v7x
topology: tpu7x:2x2x1
jax: 0.10.0
libtpu: 0.0.40
codegen_flags: <defaults>
</compile_context>

<pallas_src>
import functools

import jax
import jax.numpy as jnp
from jax.experimental import pallas as pl
from jax.experimental.pallas import tpu as pltpu


def _round_up(x, m):
    return ((x + m - 1) // m) * m


def _encoder_kernel(x_ref, wt_ref, b_ref, o_ref, *, cin, inv_scale):
    # x_ref : (1, C, hw_chunk)     pixels of one batch item (one H*W chunk),
    #                              rows 0..Cin-1 = pair 0, rows Cin..C-1 = pair 1
    # wt_ref: (Cin, E_sub, 1)      per-channel projection column (E on sublanes)
    # b_ref : (E_sub, 1)           bias column
    # o_ref : (1, E_sub, 1)        per-item embedding column (resident across
    #                              the hw-chunk axis -> accumulator)
    k = pl.program_id(1)

    @pl.when(k == 0)
    def _init():
        o_ref[...] = jnp.zeros_like(o_ref)

    # featsT: (E_sub, hw_chunk) — E on sublanes, pixels on lanes.  The K=Cin
    # projection is tiny, so it is done as Cin broadcast-FMAs on the VPU
    # instead of an MXU matmul (K=2 would waste the systolic array).
    total = None
    for p in range(2):                     # the two half-channel images (pair axis)
        z = b_ref[...]                     # (E_sub, 1), broadcasts over lanes
        for c in range(cin):
            row = x_ref[0, p * cin + c:p * cin + c + 1, :]      # (1, hw_chunk)
            z = z + wt_ref[c] * row        # (E_sub,1)*(1,hw) -> (E_sub, hw)
        f = jnp.maximum(z, 0.0)            # ReLU
        total = f if total is None else total + f

    # Pool this pixel chunk (lane-axis reduce); the constant folds both the
    # mean over H*W and the mean over the pair axis (equal counts).
    partial = jnp.sum(total, axis=1, keepdims=True) * inv_scale   # (E_sub, 1)
    o_ref[...] += partial[None]


def prepare_encoder_params(w, bias):
    """One-time packing of the synthetic-backbone params into kernel layout.

    w: (Cin, E) f32, bias: (E,) f32  ->  wt: (Cin, E_sub, 1), b: (E_sub, 1)
    (E padded to a multiple of 8 sublanes; padded rows are zero and stay zero
    through ReLU and pooling, then get sliced off.)
    """
    cin, e = w.shape
    e_sub = _round_up(e, 8)
    wt = jnp.zeros((cin, e_sub, 1), jnp.float32).at[:, :e, 0].set(w)
    b = jnp.zeros((e_sub, 1), jnp.float32).at[:e, 0].set(bias)
    return wt, b


def _pick_hw_chunk(hw):
    if hw <= 2048 or hw % 128 != 0:
        return hw
    for c in (4096, 2048, 1024, 512, 256, 128):
        if c <= hw and hw % c == 0:
            return c
    return hw


def encoder_forward(x_nchw, wt, b_col, *, embed_dim, hw_chunk=None):
    """x_nchw: (B, C, H, W) f32; wt/b_col from prepare_encoder_params.

    Returns (B, embed_dim) f32.
    """
    B, C, H, W = x_nchw.shape
    assert C % 2 == 0
    cin = C // 2
    assert wt.shape[0] == cin
    e_sub = wt.shape[1]
    HW = H * W

    if hw_chunk is None:
        hw_chunk = _pick_hw_chunk(HW)
    assert HW % hw_chunk == 0
    assert hw_chunk == HW or hw_chunk % 128 == 0
    n_hw = HW // hw_chunk

    # Free view only — no XLA transpose pass over x.
    x = x_nchw.reshape(B, C, HW)

    kernel = functools.partial(_encoder_kernel, cin=cin,
                               inv_scale=1.0 / (2.0 * HW))

    out = pl.pallas_call(
        kernel,
        out_shape=jax.ShapeDtypeStruct((B, e_sub, 1), jnp.float32),
        grid_spec=pltpu.PrefetchScalarGridSpec(
            num_scalar_prefetch=0,
            grid=(B, n_hw),                       # batch parallel, HW-chunks reduce
            in_specs=[
                # one item's pixels, one H*W chunk per step (contiguous DMA).
                pl.BlockSpec((1, C, hw_chunk), lambda i, k: (i, 0, k)),
                # weight / bias columns: constant across the grid.
                pl.BlockSpec((cin, e_sub, 1), lambda i, k: (0, 0, 0)),
                pl.BlockSpec((e_sub, 1), lambda i, k: (0, 0)),
            ],
            # Same output block across the hw-chunk axis -> resident accumulator;
            # disjoint across the batch axis -> safe to run batch in parallel.
            out_specs=pl.BlockSpec((1, e_sub, 1), lambda i, k: (i, 0, 0)),
        ),
        compiler_params=pltpu.CompilerParams(
            dimension_semantics=("parallel", "arbitrary")),
    )(x, wt, b_col)

    return out.reshape(B, e_sub)[:, :embed_dim]


def encoder_reference(x_nchw, w, bias, *, embed_dim):
    """Pure-JAX reference mirroring the PyTorch forward semantics."""
    B, C, H, W = x_nchw.shape
    cin = C // 2
    xr = x_nchw.reshape(2 * B, cin, H * W)                        # channel split
    z = jnp.einsum("pch,ce->phe", xr, w) + bias[None, None, :]    # per-pixel proj
    f = jnp.maximum(z, 0.0)                                       # ReLU
    emb = jnp.mean(f, axis=1)                                     # GAP -> (2B, E)
    return jnp.mean(emb.reshape(B, 2, embed_dim), axis=1)         # mean over pair


if __name__ == "__main__":
    # Small shapes consistent with the module's forward.
    B, C, H, W = 2, 4, 16, 16
    embed_dim = 32
    cin = C // 2

    key = jax.random.PRNGKey(0)
    kx, kw, kb = jax.random.split(key, 3)

    x = jax.random.normal(kx, (B, C, H, W), dtype=jnp.float32)
    # Deterministic synthetic backbone parameters.
    w = jax.random.normal(kw, (cin, embed_dim), dtype=jnp.float32) * 0.1
    bias = jax.random.normal(kb, (embed_dim,), dtype=jnp.float32) * 0.01

    wt, b_col = prepare_encoder_params(w, bias)   # one-time, out of the hot path

    out = jax.block_until_ready(
        encoder_forward(x, wt, b_col, embed_dim=embed_dim))
    ref = encoder_reference(x, w, bias, embed_dim=embed_dim)

    assert out.shape == (B, embed_dim)
    assert jnp.allclose(out, ref, atol=1e-4, rtol=1e-4), "mismatch vs reference"

    print("KERNEL_OK")
</pallas_src>

<mosaic_0001>
module attributes {stable_mosaic.version = 11 : i64} {
  func.func @_encoder_kernel(%arg0: i32, %arg1: i32, %arg2: memref<1x4x256xf32, #tpu.memory_space<vmem>>, %arg3: memref<2x32x1xf32, #tpu.memory_space<vmem>>, %arg4: memref<32x1xf32, #tpu.memory_space<vmem>>, %arg5: memref<1x32x1xf32, #tpu.memory_space<vmem>>) attributes {dimension_semantics = [#tpu.dimension_semantics<parallel>, #tpu.dimension_semantics<arbitrary>], iteration_bounds = array<i64: 2, 1>, scalar_prefetch = 0 : i64, scratch_operands = 0 : i64, tpu.core_type = #tpu.core_type<tc>, window_params = [{transform_indices = @transform_0, window_bounds = array<i64: 1, 4, 256>}, {pipeline_mode = #tpu.pipeline_mode<synchronous>, transform_indices = @transform_1, window_bounds = array<i64: 2, 32, 1>}, {pipeline_mode = #tpu.pipeline_mode<synchronous>, transform_indices = @transform_2, window_bounds = array<i64: 32, 1>}, {transform_indices = @transform_3, window_bounds = array<i64: 1, 32, 1>}]} {
    %c0_i32 = arith.constant 0 : i32
    %0 = arith.cmpi eq, %arg1, %c0_i32 : i32
    %1 = arith.extui %0 : i1 to i32
    %c0_i32_0 = arith.constant 0 : i32
    %2 = arith.cmpi ne, %1, %c0_i32_0 : i32
    scf.if %2 {
      %cst_34 = arith.constant 0.000000e+00 : f32
      %52 = vector.broadcast %cst_34 : f32 to vector<1x32x1xf32>
      %c0_35 = arith.constant 0 : index
      %c0_36 = arith.constant 0 : index
      %c0_37 = arith.constant 0 : index
      %53 = vector.load %arg5[%c0_35, %c0_36, %c0_37] : memref<1x32x1xf32, #tpu.memory_space<vmem>>, vector<1x32x1xf32>
      tpu.vector_store %arg5[%c0_35, %c0_36, %c0_37], %52 {strides = array<i32>} : memref<1x32x1xf32, #tpu.memory_space<vmem>>, vector<1x32x1xf32>,
    } else {
    }
    %c0 = arith.constant 0 : index
    %c0_1 = arith.constant 0 : index
    %3 = vector.load %arg4[%c0, %c0_1] : memref<32x1xf32, #tpu.memory_space<vmem>>, vector<32x1xf32>
    %c0_2 = arith.constant 0 : index
    %c0_3 = arith.constant 0 : index
    %c0_4 = arith.constant 0 : index
    %4 = vector.load %arg2[%c0_2, %c0_3, %c0_4] : memref<1x4x256xf32, #tpu.memory_space<vmem>>, vector<1x1x256xf32>
    %5 = vector.shape_cast %4 : vector<1x1x256xf32> to vector<1x256xf32>
    %c0_5 = arith.constant 0 : index
    %c0_6 = arith.constant 0 : index
    %c0_7 = arith.constant 0 : index
    %6 = vector.load %arg3[%c0_5, %c0_6, %c0_7] : memref<2x32x1xf32, #tpu.memory_space<vmem>>, vector<1x32x1xf32>
    %7 = vector.shape_cast %6 : vector<1x32x1xf32> to vector<32x1xf32>
    %8 = vector.broadcast %7 : vector<32x1xf32> to vector<32x256xf32>
    %9 = vector.broadcast %5 : vector<1x256xf32> to vector<32x256xf32>
    %10 = arith.mulf %8, %9 : vector<32x256xf32>
    %11 = vector.broadcast %3 : vector<32x1xf32> to vector<32x256xf32>
    %12 = arith.addf %11, %10 : vector<32x256xf32>
    %c0_8 = arith.constant 0 : index
    %c1 = arith.constant 1 : index
    %c0_9 = arith.constant 0 : index
    %13 = vector.load %arg2[%c0_8, %c1, %c0_9] : memref<1x4x256xf32, #tpu.memory_space<vmem>>, vector<1x1x256xf32>
    %14 = vector.shape_cast %13 : vector<1x1x256xf32> to vector<1x256xf32>
    %c1_10 = arith.constant 1 : index
    %c0_11 = arith.constant 0 : index
    %c0_12 = arith.constant 0 : index
    %15 = vector.load %arg3[%c1_10, %c0_11, %c0_12] : memref<2x32x1xf32, #tpu.memory_space<vmem>>, vector<1x32x1xf32>
    %16 = vector.shape_cast %15 : vector<1x32x1xf32> to vector<32x1xf32>
    %17 = vector.broadcast %16 : vector<32x1xf32> to vector<32x256xf32>
    %18 = vector.broadcast %14 : vector<1x256xf32> to vector<32x256xf32>
    %19 = arith.mulf %17, %18 : vector<32x256xf32>
    %20 = arith.addf %12, %19 : vector<32x256xf32>
    %cst = arith.constant 0.000000e+00 : f32
    %21 = vector.broadcast %cst : f32 to vector<32x256xf32>
    %22 = arith.maximumf %20, %21 : vector<32x256xf32>
    %c0_13 = arith.constant 0 : index
    %c0_14 = arith.constant 0 : index
    %23 = vector.load %arg4[%c0_13, %c0_14] : memref<32x1xf32, #tpu.memory_space<vmem>>, vector<32x1xf32>
    %c0_15 = arith.constant 0 : index
    %c2 = arith.constant 2 : index
    %c0_16 = arith.constant 0 : index
    %24 = vector.load %arg2[%c0_15, %c2, %c0_16] : memref<1x4x256xf32, #tpu.memory_space<vmem>>, vector<1x1x256xf32>
    %25 = vector.shape_cast %24 : vector<1x1x256xf32> to vector<1x256xf32>
    %c0_17 = arith.constant 0 : index
    %c0_18 = arith.constant 0 : index
    %c0_19 = arith.constant 0 : index
    %26 = vector.load %arg3[%c0_17, %c0_18, %c0_19] : memref<2x32x1xf32, #tpu.memory_space<vmem>>, vector<1x32x1xf32>
    %27 = vector.shape_cast %26 : vector<1x32x1xf32> to vector<32x1xf32>
    %28 = vector.broadcast %27 : vector<32x1xf32> to vector<32x256xf32>
    %29 = vector.broadcast %25 : vector<1x256xf32> to vector<32x256xf32>
    %30 = arith.mulf %28, %29 : vector<32x256xf32>
    %31 = vector.broadcast %23 : vector<32x1xf32> to vector<32x256xf32>
    %32 = arith.addf %31, %30 : vector<32x256xf32>
    %c0_20 = arith.constant 0 : index
    %c3 = arith.constant 3 : index
    %c0_21 = arith.constant 0 : index
    %33 = vector.load %arg2[%c0_20, %c3, %c0_21] : memref<1x4x256xf32, #tpu.memory_space<vmem>>, vector<1x1x256xf32>
    %34 = vector.shape_cast %33 : vector<1x1x256xf32> to vector<1x256xf32>
    %c1_22 = arith.constant 1 : index
    %c0_23 = arith.constant 0 : index
    %c0_24 = arith.constant 0 : index
    %35 = vector.load %arg3[%c1_22, %c0_23, %c0_24] : memref<2x32x1xf32, #tpu.memory_space<vmem>>, vector<1x32x1xf32>
    %36 = vector.shape_cast %35 : vector<1x32x1xf32> to vector<32x1xf32>
    %37 = vector.broadcast %36 : vector<32x1xf32> to vector<32x256xf32>
    %38 = vector.broadcast %34 : vector<1x256xf32> to vector<32x256xf32>
    %39 = arith.mulf %37, %38 : vector<32x256xf32>
    %40 = arith.addf %32, %39 : vector<32x256xf32>
    %cst_25 = arith.constant 0.000000e+00 : f32
    %41 = vector.broadcast %cst_25 : f32 to vector<32x256xf32>
    %42 = arith.maximumf %40, %41 : vector<32x256xf32>
    %43 = arith.addf %22, %42 : vector<32x256xf32>
    %cst_26 = arith.constant dense<0.000000e+00> : vector<32xf32>
    %44 = vector.multi_reduction <add>, %43, %cst_26 [1] : vector<32x256xf32> to vector<32xf32>
    %45 = vector.shape_cast %44 : vector<32xf32> to vector<32x1xf32>
    %cst_27 = arith.constant 0.001953125 : f32
    %46 = vector.broadcast %cst_27 : f32 to vector<32x1xf32>
    %47 = arith.mulf %45, %46 : vector<32x1xf32>
    %c0_28 = arith.constant 0 : index
    %c0_29 = arith.constant 0 : index
    %c0_30 = arith.constant 0 : index
    %48 = vector.load %arg5[%c0_28, %c0_29, %c0_30] : memref<1x32x1xf32, #tpu.memory_space<vmem>>, vector<1x32x1xf32>
    %49 = vector.shape_cast %47 : vector<32x1xf32> to vector<1x32x1xf32>
    %50 = arith.addf %48, %49 : vector<1x32x1xf32>
    %c0_31 = arith.constant 0 : index
    %c0_32 = arith.constant 0 : index
    %c0_33 = arith.constant 0 : index
    %51 = vector.load %arg5[%c0_31, %c0_32, %c0_33] : memref<1x32x1xf32, #tpu.memory_space<vmem>>, vector<1x32x1xf32>
    tpu.vector_store %arg5[%c0_31, %c0_32, %c0_33], %50 {strides = array<i32>} : memref<1x32x1xf32, #tpu.memory_space<vmem>>, vector<1x32x1xf32>,
    return
  }
  func.func @transform_0(%arg0: i32, %arg1: i32) -> (i32, i32, i32) {
    %c0_i32 = arith.constant 0 : i32
    %c0_i32_0 = arith.constant 0 : i32
    return %arg0, %c0_i32, %arg1 : i32, i32, i32
  }
  func.func @transform_1(%arg0: i32, %arg1: i32) -> (i32, i32, i32) {
    %c0_i32 = arith.constant 0 : i32
    %c0_i32_0 = arith.constant 0 : i32
    %c0_i32_1 = arith.constant 0 : i32
    %c0_i32_2 = arith.constant 0 : i32
    return %c0_i32, %c0_i32_0, %c0_i32_1 : i32, i32, i32
  }
  func.func @transform_2(%arg0: i32, %arg1: i32) -> (i32, i32) {
    %c0_i32 = arith.constant 0 : i32
    %c0_i32_0 = arith.constant 0 : i32
    %c0_i32_1 = arith.constant 0 : i32
    return %c0_i32, %c0_i32_0 : i32, i32
  }
  func.func @transform_3(%arg0: i32, %arg1: i32) -> (i32, i32, i32) {
    %c0_i32 = arith.constant 0 : i32
    %c0_i32_0 = arith.constant 0 : i32
    %c0_i32_1 = arith.constant 0 : i32
    return %arg0, %c0_i32, %c0_i32_0 : i32, i32, i32
  }
}

</mosaic_0001>

<bundles_post_ra>
// kernel: tpu_custom_call.1
= control target key start
LH: loop header
LB: loop body
LE: loop exit
PB: predicated region body
PF: predicated region fallthrough
CT: control target
= control target key end

     0   :  { %s612_s12 = smov 0   ;;  %s614_s13 = smov 0   ;;  %s707_s0 = inlined_call_operand.vmem [shape: f32[2,4,256], index: 0, kind: input, shape index: {}]   ;;  %s708_s1 = inlined_call_operand.vmem [shape: f32[2,32,1], index: 1, kind: input, shape index: {}]   ;;  %s709_s2 = inlined_call_operand.vmem [shape: f32[32,1], index: 2, kind: input, shape index: {}]   ;;  %s710_s3 = inlined_call_operand.vmem [shape: f32[2,32,1], index: 3, kind: output, shape index: {}]  }
   0x1   :  { %s616_s14 = smov 0  }
   0x2 LB: > { %s25_s15 = sadd.s32 1, %s584_s13  ;;  %p522_p0 = scmp.ge.s32.totalorder %s588_s14, 1  ;;  %s588_s14 = sphi %s616_s14, %s13_s14   ;;  %s584_s13 = sphi %s614_s13, %s712_s13   ;;  %s580_s12 = sphi %s612_s12, %s711_s12  }
   0x3   : > { %p27_p1 = scmp.ge.s32.totalorder %s25_s15, 2  ;;  %p156_p2 = scmp.lt.s32.totalorder %s588_s14, 3 }
   0x5   : > { %s714_s15 = smov (%p27_p1, %s25_s15), 0  ;;  %p157_p3 = pnand %p522_p0, %p156_p2 }
   0x6   : > { %v215_v0 = vld [vmem:[%s708_s1 + $0x10] sm:$0xff] (!%p157_p3)  ;;  %v213_v1 = vld [vmem:[%s708_s1] sm:$0xff] (!%p157_p3)  ;;  %v590_v2 = vmov (!%p157_p3), 0   ;;  %v216_v3 = vld [vmem:[%s708_s1 + $0x18] sm:$0xff] (!%p157_p3)  ;;  %p185_p4 = scmp.lt.s32.totalorder (!%p157_p3), %s580_s12, 1  ;;  %vm203_vm0 = vcmask (!%p157_p3), 7168   ;;  %v238_v14 = vlaneseq (!%p157_p3) }
   0x7   : > { %160 = sbr.rel (%p157_p3) target bundleno = 320 (0x140), region = 32  ;;  %565 = vset.pattern.permute.xlu1 (!%p157_p3), %v590_v2  ;;  %564 = vset.pattern.permute.xlu0 (!%p157_p3), %v590_v2  ;;  %v214_v4 = vld [vmem:[%s708_s1 + $0x8] sm:$0xff] (!%p157_p3)  ;;  %v208_v6 = vld [vmem:[%s709_s2] sm:$0xff] (!%p157_p3)  ;;  %v211_v7 = vld [vmem:[%s709_s2 + $0x18] sm:$0xff] (!%p157_p3)  ;;  %v591_v13 = vmov (!%p157_p3), 0.0  }
   0x8   : > { %229 = vperm.xlu1 (!%p157_p3), %565, %v215_v0   ;;  %219 = vperm.xlu0 (!%p157_p3), %564, %v213_v1   ;;  %v209_v5 = vld [vmem:[%s709_s2 + $0x8] sm:$0xff] (!%p157_p3)  ;;  %v210_v8 = vld [vmem:[%s709_s2 + $0x10] sm:$0xff] (!%p157_p3)  ;;  %v528_v10 = vld [vmem:[%s708_s1 + $0x20] sm:$0xff] (!%p157_p3)  ;;  %v239_v15 = vshrl.u32 (!%p157_p3), %v238_v14, 7 }
   0x9   : > { %v529_v9 = vld [vmem:[%s708_s1 + $0x28] sm:$0xff] (!%p157_p3)  ;;  %v531_v11 = vld [vmem:[%s708_s1 + $0x38] sm:$0xff] (!%p157_p3)  ;;  %v530_v12 = vld [vmem:[%s708_s1 + $0x30] sm:$0xff] (!%p157_p3) }
   0xa   : > { %v240_v18 = vsub.s32 (!%p157_p3), 0, %v239_v15  ;;  %v244_v19 = vsub.s32 (!%p157_p3), 1, %v239_v15 }
   0xc   : > { %234 = vperm.xlu1 (!%p157_p3), %565, %v216_v3   ;;  %224 = vperm.xlu0 (!%p157_p3), %564, %v214_v4  }
   0xe   : > { %s716_s12 = smov (!%p185_p4, %s580_s12), 1 }
   0xf   : > { %s537_s17 = sshll.u32 %s716_s12, 5  ;;  %s536_s21 = sshll.u32 %s716_s12, 3 }
  0x10   : > { %263 = vperm.xlu1 %565, %v209_v5   ;;  %258 = vperm.xlu0 %564, %v208_v6   ;;  %s673_s20 = scalar_lea.vmem %s710_s3, %s537_s17  ;;  %s192_s24 = scalar_lea.vmem %s707_s0, %s536_s21 }
  0x11   : > { %205 = vst.msk [vmem:[%s673_s20 + $0x8] sm:$0xff] %vm203_vm0, %v591_v13  ;;  %204 = vst.msk [vmem:[%s673_s20] sm:$0xff] %vm203_vm0, %v591_v13  ;;  %v212_v20 = vld [vmem:[%s192_s24] ss:$4 sm:$0x3] }
  0x12   : > { %206 = vst.msk [vmem:[%s673_s20 + $0x10] sm:$0xff] %vm203_vm0, %v591_v13  ;;  %207 = vst.msk [vmem:[%s673_s20 + $0x18] sm:$0xff] %vm203_vm0, %v591_v13  ;;  %v532_v21 = vld [vmem:[%s192_s24 + $0x2] ss:$4 sm:$0x3]  ;;  %v241_v26 = vrot.slane %v212_v20, %v240_v18  ;;  %v245_v27 = vrot.slane %v212_v20, %v244_v19 }
  0x13   : > { %v527_v24 = vld [vmem:[%s192_s24 + $0x1] ss:$4 sm:$0x3]  ;;  %v533_v25 = vld [vmem:[%s192_s24 + $0x3] ss:$4 sm:$0x3]  ;;  %v352_v28 = vrot.slane %v532_v21, %v240_v18  ;;  %v356_v29 = vrot.slane %v532_v21, %v244_v19 }
  0x14   : > { %273 = vperm.xlu1 %565, %v211_v7   ;;  %268 = vperm.xlu0 %564, %v210_v8   ;;  %v315_v32 = vrot.slane %v527_v24, %v240_v18  ;;  %v319_v33 = vrot.slane %v527_v24, %v244_v19  ;;  %v381_v34 = vrot.slane %v533_v25, %v240_v18 }
  0x15   : > { %v385_v35 = vrot.slane %v533_v25, %v244_v19 }
  0x18   : > { %298 = vperm.xlu1 %565, %v529_v9   ;;  %293 = vperm.xlu0 %564, %v528_v10  }
  0x1c   : > { %308 = vperm.xlu1 %565, %v531_v11   ;;  %303 = vperm.xlu0 %564, %v530_v12  }
  0x87   : > { %v230_v16 = vpop.permute.xlu1 %229  ;;  %v220_v17 = vpop.permute.xlu0 %219 }
  0x88   : > { %v252_v36 = vmul.f32 %v241_v26, %v230_v16  ;;  %v253_v37 = vmul.f32 %v245_v27, %v230_v16  ;;  %v363_v38 = vmul.f32 %v352_v28, %v230_v16  ;;  %v364_v39 = vmul.f32 %v356_v29, %v230_v16 }
  0x89   : > { %v248_v40 = vmul.f32 %v241_v26, %v220_v17  ;;  %v249_v41 = vmul.f32 %v245_v27, %v220_v17  ;;  %v359_v42 = vmul.f32 %v352_v28, %v220_v17  ;;  %v360_v43 = vmul.f32 %v356_v29, %v220_v17 }
  0x8b   : > { %v235_v22 = vpop.permute.xlu1 %234  ;;  %v225_v23 = vpop.permute.xlu0 %224 }
  0x8c   : > { %v250_v44 = vmul.f32 %v241_v26, %v225_v23  ;;  %v251_v45 = vmul.f32 %v245_v27, %v225_v23  ;;  %v361_v46 = vmul.f32 %v352_v28, %v225_v23  ;;  %v362_v47 = vmul.f32 %v356_v29, %v225_v23 }
  0x8d   : > { %v254_v48 = vmul.f32 %v241_v26, %v235_v22  ;;  %v255_v49 = vmul.f32 %v245_v27, %v235_v22  ;;  %v365_v50 = vmul.f32 %v352_v28, %v235_v22  ;;  %v366_v51 = vmul.f32 %v356_v29, %v235_v22 }
  0x8f   : > { %v264_v30 = vpop.permute.xlu1 %263  ;;  %v259_v31 = vpop.permute.xlu0 %258 }
  0x90   : > { %v278_v54 = vadd.f32 %v264_v30, %v250_v44  ;;  %v279_v55 = vadd.f32 %v264_v30, %v251_v45  ;;  %v369_v56 = vadd.f32 %v361_v46, %v264_v30  ;;  %v370_v57 = vadd.f32 %v362_v47, %v264_v30 }
  0x91   : > { %v276_v58 = vadd.f32 %v259_v31, %v248_v40  ;;  %v277_v59 = vadd.f32 %v259_v31, %v249_v41  ;;  %v367_v60 = vadd.f32 %v359_v42, %v259_v31  ;;  %v368_v61 = vadd.f32 %v360_v43, %v259_v31 }
  0x93   : > { %v274_v52 = vpop.permute.xlu1 %273  ;;  %v269_v53 = vpop.permute.xlu0 %268 }
  0x94   : > { %v282_v62 = vadd.f32 %v274_v52, %v254_v48  ;;  %v283_v63 = vadd.f32 %v274_v52, %v255_v49  ;;  %v373_v0 = vadd.f32 %v365_v50, %v274_v52  ;;  %v374_v1 = vadd.f32 %v366_v51, %v274_v52 }
  0x95   : > { %v280_v2 = vadd.f32 %v269_v53, %v252_v36  ;;  %v281_v3 = vadd.f32 %v269_v53, %v253_v37  ;;  %v371_v4 = vadd.f32 %v363_v38, %v269_v53  ;;  %v372_v5 = vadd.f32 %v364_v39, %v269_v53 }
  0x97   : > { %v299_v6 = vpop.permute.xlu1 %298  ;;  %v294_v7 = vpop.permute.xlu0 %293 }
  0x98   : > { %v324_v8 = vmul.f32 %v315_v32, %v299_v6  ;;  %v325_v9 = vmul.f32 %v319_v33, %v299_v6  ;;  %v390_v10 = vmul.f32 %v381_v34, %v299_v6  ;;  %v391_v11 = vmul.f32 %v385_v35, %v299_v6 }
  0x99   : > { %v322_v12 = vmul.f32 %v315_v32, %v294_v7  ;;  %v323_v13 = vmul.f32 %v319_v33, %v294_v7  ;;  %v388_v14 = vmul.f32 %v381_v34, %v294_v7  ;;  %v389_v15 = vmul.f32 %v385_v35, %v294_v7 }
  0x9a   : > { %v332_v16 = vadd.f32 %v324_v8, %v278_v54  ;;  %v333_v17 = vadd.f32 %v325_v9, %v279_v55  ;;  %v398_v18 = vadd.f32 %v390_v10, %v369_v56  ;;  %v399_v19 = vadd.f32 %v391_v11, %v370_v57  ;;  %v437_v8 = vld [vmem:[%s673_s20 + $0x8] sm:$0xff]  ;;  %v436_v9 = vld [vmem:[%s673_s20] sm:$0xff] }
  0x9b   : > { %v309_v20 = vpop.permute.xlu1 %308  ;;  %v304_v21 = vpop.permute.xlu0 %303  ;;  %v330_v22 = vadd.f32 %v322_v12, %v276_v58  ;;  %v331_v23 = vadd.f32 %v323_v13, %v277_v59  ;;  %v396_v24 = vadd.f32 %v388_v14, %v367_v60  ;;  %v397_v25 = vadd.f32 %v389_v15, %v368_v61  ;;  %v438_v14 = vld [vmem:[%s673_s20 + $0x10] sm:$0xff] }
  0x9c   : > { %v328_v26 = vmul.f32 %v315_v32, %v309_v20  ;;  %v329_v27 = vmul.f32 %v319_v33, %v309_v20  ;;  %v394_v28 = vmul.f32 %v381_v34, %v309_v20  ;;  %v395_v29 = vmul.f32 %v385_v35, %v309_v20 }
  0x9d   : > { %v326_v30 = vmul.f32 %v315_v32, %v304_v21  ;;  %v327_v31 = vmul.f32 %v319_v33, %v304_v21  ;;  %v392_v36 = vmul.f32 %v381_v34, %v304_v21  ;;  %v393_v37 = vmul.f32 %v385_v35, %v304_v21 }
  0x9e   : > { %v340_v38 = vmax.f32 %v332_v16, 0.0  ;;  %v341_v39 = vmax.f32 %v333_v17, 0.0  ;;  %v406_v40 = vmax.f32 %v398_v18, 0.0  ;;  %v407_v41 = vmax.f32 %v399_v19, 0.0  ;;  %v439_v18 = vld [vmem:[%s673_s20 + $0x18] sm:$0xff] }
  0x9f   : > { %v338_v42 = vmax.f32 %v330_v22, 0.0  ;;  %v339_v43 = vmax.f32 %v331_v23, 0.0  ;;  %v404_v44 = vmax.f32 %v396_v24, 0.0  ;;  %v405_v45 = vmax.f32 %v397_v25, 0.0 }
  0xa0   : > { %v414_v46 = vadd.f32 %v406_v40, %v340_v38  ;;  %v415_v47 = vadd.f32 %v407_v41, %v341_v39  ;;  %v334_v48 = vadd.f32 %v326_v30, %v280_v2  ;;  %v335_v49 = vadd.f32 %v327_v31, %v281_v3 }
  0xa1   : > { %v412_v50 = vadd.f32 %v404_v44, %v338_v42  ;;  %v413_v51 = vadd.f32 %v405_v45, %v339_v43  ;;  %v400_v52 = vadd.f32 %v392_v36, %v371_v4  ;;  %v401_v53 = vadd.f32 %v393_v37, %v372_v5 }
  0xa2   : > { %v423_v32 = vadd.f32 %v415_v47, %v414_v46  ;;  %v342_v33 = vmax.f32 %v334_v48, 0.0  ;;  %v343_v34 = vmax.f32 %v335_v49, 0.0  ;;  %v336_v35 = vadd.f32 %v328_v26, %v282_v62 }
  0xa3   : > { %v420_v54 = vadd.f32 %v413_v51, %v412_v50  ;;  %v408_v55 = vmax.f32 %v400_v52, 0.0  ;;  %v409_v56 = vmax.f32 %v401_v53, 0.0  ;;  %v337_v57 = vadd.f32 %v329_v27, %v283_v63 }
  0xa4   : > { %424 = vadd.xlane.f32.xlu1 %v423_v32  ;;  %v344_v58 = vmax.f32 %v336_v35, 0.0  ;;  %v402_v59 = vadd.f32 %v394_v28, %v373_v0  ;;  %v403_v60 = vadd.f32 %v395_v29, %v374_v1 }
  0xa5   : > { %421 = vadd.xlane.f32.xlu0 %v420_v54  ;;  %v416_v61 = vadd.f32 %v408_v55, %v342_v33  ;;  %v417_v2 = vadd.f32 %v409_v56, %v343_v34  ;;  %v345_v3 = vmax.f32 %v337_v57, 0.0 }
  0xa6   : > { %v410_v4 = vmax.f32 %v402_v59, 0.0  ;;  %v411_v5 = vmax.f32 %v403_v60, 0.0 }
  0xa7   : > { %v426_v6 = vadd.f32 %v417_v2, %v416_v61 }
  0xa8   : > { %v418_v62 = vadd.f32 %v410_v4, %v344_v58  ;;  %v419_v7 = vadd.f32 %v411_v5, %v345_v3 }
  0xa9   : > { %427 = vadd.xlane.f32.xlu0 %v426_v6 }
  0xaa   : > { %v429_v63 = vadd.f32 %v419_v7, %v418_v62 }
  0xad   : > { %430 = vadd.xlane.f32.xlu0 %v429_v63 }
 0x131   : > { %v425_v0 = vpop.xlane.xlu1 %424 }
 0x132   : > { %v433_v1 = vmul.f32 0.001953125, %v425_v0  ;;  %v422_v10 = vpop.xlane.xlu0 %421 }
 0x133   : > { %v432_v11 = vmul.f32 0.001953125, %v422_v10 }
 0x134   : > { %v441_v12 = vadd.f32 %v437_v8, %v433_v1 }
 0x135   : > { %v440_v13 = vadd.f32 %v436_v9, %v432_v11 }
 0x136   : > { %446 = vst.msk [vmem:[%s673_s20 + $0x8] sm:$0xff] %vm203_vm0, %v441_v12  ;;  %v428_v15 = vpop.xlane.xlu0 %427 }
 0x137   : > { %445 = vst.msk [vmem:[%s673_s20] sm:$0xff] %vm203_vm0, %v440_v13  ;;  %v434_v16 = vmul.f32 0.001953125, %v428_v15 }
 0x139   : > { %v442_v17 = vadd.f32 %v438_v14, %v434_v16 }
 0x13a   : > { %v431_v19 = vpop.xlane.xlu0 %430 }
 0x13b   : > { %447 = vst.msk [vmem:[%s673_s20 + $0x10] sm:$0xff] %vm203_vm0, %v442_v17  ;;  %v435_v20 = vmul.f32 0.001953125, %v431_v19 }
 0x13d   : > { %v443_v21 = vadd.f32 %v439_v18, %v435_v20 }
 0x13f   : > { %448 = vst.msk [vmem:[%s673_s20 + $0x18] sm:$0xff] %vm203_vm0, %v443_v21 }
 0x140 PF: > { %s13_s14 = sadd.s32 1, %s588_s14   ;;  %s711_s12 = smov %s584_s13 }
 0x141   : > { %p10_p5 = scmp.ge.s32.totalorder %s13_s14, 4   ;;  %s712_s13 = smov %s714_s15 }
 0x143   :  { %12 = sbr.rel (!%p10_p5) target bundleno = 2 (0x2), region = 70 }

</bundles_post_ra>
